<compile_context>
chip_gen: v5e
topology: v5e:2x2
jax: 0.10.0
libtpu: 0.0.40
codegen_flags: <defaults>
</compile_context>

<pallas_src>
import functools
import math

import jax
import jax.numpy as jnp
from jax.experimental import pallas as pl
from jax.experimental.pallas import tpu as pltpu


# ---------------------------------------------------------------------------
# Kernel
# ---------------------------------------------------------------------------
def _gcn_layer_kernel(seq_ref, adj_ref, w_ref, b_ref, alpha_ref, o_ref, acc_ref):
    """Fused: acc += adj_tile @ (seq_tile @ W); finalize: PReLU(acc + b)."""
    k = pl.program_id(2)

    @pl.when(k == 0)
    def _init():
        acc_ref[...] = jnp.zeros_like(acc_ref)

    x = seq_ref[0]                                    # (tk, F_in), compute dtype
    support = jnp.dot(x, w_ref[...],                  # (tk, Fp)  f32 accumulate
                      preferred_element_type=jnp.float32)
    adj_blk = adj_ref[0]                              # (tm, tk)
    acc_ref[...] += jnp.dot(adj_blk, support.astype(adj_blk.dtype),
                            preferred_element_type=jnp.float32)

    @pl.when(k == pl.num_programs(2) - 1)
    def _finalize():
        out = acc_ref[...] + b_ref[...]               # (tm, Fp) + (1, Fp)
        alpha = alpha_ref[0]                          # scalar PReLU weight (SMEM)
        o_ref[0] = jnp.where(out > 0, out, alpha * out).astype(o_ref.dtype)


# ---------------------------------------------------------------------------
# Wrapper
# ---------------------------------------------------------------------------
def _pick_tile(n, preferred):
    """Largest of {preferred, 128, full} that divides n (keeps (8,128) rules)."""
    if n % preferred == 0:
        return preferred
    if preferred > 128 and n % 128 == 0:
        return 128
    return n  # full extent (small graphs) — always legal


@functools.partial(jax.jit, static_argnames=("sparse", "compute_dtype", "tile"))
def gcn_layer_forward(params, seq, adj, sparse=False,
                      compute_dtype="float32", tile=256):
    """PReLU(bmm(adj, seq @ W) + b).  tile=256 for v6e/v7x, 128 for v5e."""
    # TODO(synk): sparse=True (torch.spmm on a sparse adjacency) is not
    # implemented as a true sparse gather kernel; dense bmm fallback is used.
    B, N, F_in = seq.shape
    if adj.ndim == 2:  # sparse-path calling convention uses an unbatched adj
        adj = jnp.broadcast_to(adj, (B, N, N))

    weight = params["weight"]          # (F_in, F_out)  == fc.weight.T
    bias = params["bias"]              # (F_out,)
    alpha = params["alpha"]            # scalar PReLU weight
    F_out = weight.shape[1]

    # Lane-dense output: pad feature axis to a multiple of 128.
    Fp = int(pl.cdiv(F_out, 128)) * 128
    if Fp != F_out:
        weight = jnp.pad(weight, ((0, 0), (0, Fp - F_out)))
        bias = jnp.pad(bias, ((0, Fp - F_out),))
    b2d = bias.reshape(1, Fp).astype(jnp.float32)
    alpha_arr = jnp.asarray(alpha, jnp.float32).reshape(1)

    cdt = jnp.dtype(compute_dtype)
    seq_c = seq.astype(cdt)            # bf16 halves x/W HBM traffic on v6e/v7x
    w_c = weight.astype(cdt)
    adj_c = adj.astype(jnp.float32)    # keep row-normalized adj in f32

    tm = _pick_tile(N, tile)
    tk = tm
    grid = (B, N // tm, N // tk)

    # Advisory cost estimate for XLA scheduling.
    n_row_tiles = N // tm
    flops = 2 * B * N * F_in * Fp * n_row_tiles + 2 * B * N * N * Fp
    bytes_accessed = (adj_c.size * adj_c.dtype.itemsize
                      + seq_c.size * seq_c.dtype.itemsize * n_row_tiles
                      + w_c.size * w_c.dtype.itemsize
                      + B * N * Fp * 4)
    cost = pl.CostEstimate(flops=flops, transcendentals=0,
                           bytes_accessed=bytes_accessed)

    out_p = pl.pallas_call(
        _gcn_layer_kernel,
        out_shape=jax.ShapeDtypeStruct((B, N, Fp), jnp.float32),
        grid=grid,
        in_specs=[
            pl.BlockSpec((1, tk, F_in), lambda b, i, k: (b, k, 0)),   # seq
            pl.BlockSpec((1, tm, tk),  lambda b, i, k: (b, i, k)),    # adj
            pl.BlockSpec((F_in, Fp),   lambda b, i, k: (0, 0)),       # W
            pl.BlockSpec((1, Fp),      lambda b, i, k: (0, 0)),       # bias
            pl.BlockSpec(memory_space=pltpu.MemorySpace.SMEM),        # alpha
        ],
        out_specs=pl.BlockSpec((1, tm, Fp), lambda b, i, k: (b, i, 0)),
        scratch_shapes=[pltpu.VMEM((tm, Fp), jnp.float32)],
        compiler_params=pltpu.CompilerParams(
            dimension_semantics=("parallel", "parallel", "arbitrary")),
        cost_estimate=cost,
    )(seq_c, adj_c, w_c, b2d, alpha_arr)

    return out_p[:, :, :F_out]


# ---------------------------------------------------------------------------
# Parameter init matching the PyTorch module
# ---------------------------------------------------------------------------
def init_gcn_layer_params(key, in_ft, out_ft):
    """xavier_uniform_ on fc.weight, bias=0, PReLU alpha=0.25 (torch defaults)."""
    bound = math.sqrt(6.0 / (in_ft + out_ft))
    weight = jax.random.uniform(key, (in_ft, out_ft), jnp.float32, -bound, bound)
    return {
        "weight": weight,                      # stored as fc.weight.T
        "bias": jnp.zeros((out_ft,), jnp.float32),
        "alpha": jnp.float32(0.25),
    }


# ---------------------------------------------------------------------------
# Pure-JAX reference
# ---------------------------------------------------------------------------
def gcn_layer_ref(params, seq, adj):
    seq_fts = seq @ params["weight"]
    out = jnp.einsum("bij,bjf->bif", adj, seq_fts) + params["bias"]
    return jnp.where(out > 0, out, params["alpha"] * out)


def _make_graph(key, b, n):
    a = (jax.random.uniform(key, (b, n, n)) < 0.3).astype(jnp.float32)
    a = jnp.maximum(a, jnp.swapaxes(a, 1, 2)) + jnp.eye(n, dtype=jnp.float32)[None]
    return a / jnp.sum(a, axis=2, keepdims=True)   # row-normalized, self-loops


if __name__ == "__main__":
    key = jax.random.PRNGKey(0)
    ks, ka, kp, ks2, ka2 = jax.random.split(key, 5)

    # --- small case (full-extent blocks, grid (B,1,1)) ----------------------
    B, N, IN_FT, OUT_FT = 2, 16, 32, 64
    seq = jax.random.normal(ks, (B, N, IN_FT), jnp.float32)
    adj = _make_graph(ka, B, N)
    params = init_gcn_layer_params(kp, IN_FT, OUT_FT)

    out = jax.block_until_ready(gcn_layer_forward(params, seq, adj))
    ref = gcn_layer_ref(params, seq, adj)
    assert out.shape == (B, N, OUT_FT), out.shape
    assert jnp.allclose(out, ref, atol=1e-4, rtol=1e-4), "small f32 mismatch"

    # --- tiled case (N=512, 256-tiles -> grid (2,2,2)) -----------------------
    N2 = 512
    seq2 = jax.random.normal(ks2, (B, N2, IN_FT), jnp.float32)
    adj2 = _make_graph(ka2, B, N2)

    out2 = jax.block_until_ready(gcn_layer_forward(params, seq2, adj2, tile=256))
    ref2 = gcn_layer_ref(params, seq2, adj2)
    assert out2.shape == (B, N2, OUT_FT), out2.shape
    assert jnp.allclose(out2, ref2, atol=2e-3, rtol=2e-3), "tiled f32 mismatch"

    # --- bf16-compute path (f32 accumulate, adj kept f32) --------------------
    out2_bf16 = jax.block_until_ready(
        gcn_layer_forward(params, seq2, adj2, compute_dtype="bfloat16", tile=256))
    assert jnp.allclose(out2_bf16, ref2, atol=5e-2, rtol=5e-2), "bf16 mismatch"

    print("KERNEL_OK")
</pallas_src>

<mosaic_0001>
module attributes {stable_mosaic.version = 11 : i64} {
  func.func @_gcn_layer_kernel(%arg0: i32, %arg1: i32, %arg2: i32, %arg3: memref<1x16x32xf32, #tpu.memory_space<vmem>>, %arg4: memref<1x16x16xf32, #tpu.memory_space<vmem>>, %arg5: memref<32x128xf32, #tpu.memory_space<vmem>>, %arg6: memref<1x128xf32, #tpu.memory_space<vmem>>, %arg7: memref<1xf32, #tpu.memory_space<smem>>, %arg8: memref<1x16x128xf32, #tpu.memory_space<vmem>>, %arg9: memref<16x128xf32, #tpu.memory_space<vmem>>) attributes {dimension_semantics = [#tpu.dimension_semantics<parallel>, #tpu.dimension_semantics<parallel>, #tpu.dimension_semantics<arbitrary>], iteration_bounds = array<i64: 2, 1, 1>, scalar_prefetch = 0 : i64, scratch_operands = 1 : i64, tpu.core_type = #tpu.core_type<tc>, window_params = [{transform_indices = @transform_0, window_bounds = array<i64: 1, 16, 32>}, {transform_indices = @transform_1, window_bounds = array<i64: 1, 16, 16>}, {pipeline_mode = #tpu.pipeline_mode<synchronous>, transform_indices = @transform_2, window_bounds = array<i64: 32, 128>}, {pipeline_mode = #tpu.pipeline_mode<synchronous>, transform_indices = @transform_3, window_bounds = array<i64: 1, 128>}, {transform_indices = @transform_4, window_bounds = array<i64: 1>}, {transform_indices = @transform_5, window_bounds = array<i64: 1, 16, 128>}]} {
    %c0_i32 = arith.constant 0 : i32
    %0 = arith.cmpi eq, %arg2, %c0_i32 : i32
    %1 = arith.extui %0 : i1 to i32
    %c0_i32_0 = arith.constant 0 : i32
    %2 = arith.cmpi ne, %1, %c0_i32_0 : i32
    scf.if %2 {
      %cst_15 = arith.constant 0.000000e+00 : f32
      %16 = vector.broadcast %cst_15 : f32 to vector<16x128xf32>
      %c0_16 = arith.constant 0 : index
      %c0_17 = arith.constant 0 : index
      %17 = vector.load %arg9[%c0_16, %c0_17] : memref<16x128xf32, #tpu.memory_space<vmem>>, vector<16x128xf32>
      tpu.vector_store %arg9[%c0_16, %c0_17], %16 {strides = array<i32>} : memref<16x128xf32, #tpu.memory_space<vmem>>, vector<16x128xf32>,
    } else {
    }
    %c0 = arith.constant 0 : index
    %c0_1 = arith.constant 0 : index
    %c0_2 = arith.constant 0 : index
    %3 = vector.load %arg3[%c0, %c0_1, %c0_2] : memref<1x16x32xf32, #tpu.memory_space<vmem>>, vector<1x16x32xf32>
    %4 = vector.shape_cast %3 : vector<1x16x32xf32> to vector<16x32xf32>
    %c0_3 = arith.constant 0 : index
    %c0_4 = arith.constant 0 : index
    %5 = vector.load %arg5[%c0_3, %c0_4] : memref<32x128xf32, #tpu.memory_space<vmem>>, vector<32x128xf32>
    %cst = arith.constant dense<0.000000e+00> : vector<16x128xf32>
    %6 = tpu.matmul %4, %5, %cst {dimension_numbers = #tpu.dot_dimension_numbers<[1], [0], [0], [1], [0, 0, 1, 1], [], []>} : vector<16x32xf32>, vector<32x128xf32>, vector<16x128xf32> -> vector<16x128xf32>
    %c0_5 = arith.constant 0 : index
    %c0_6 = arith.constant 0 : index
    %c0_7 = arith.constant 0 : index
    %7 = vector.load %arg4[%c0_5, %c0_6, %c0_7] : memref<1x16x16xf32, #tpu.memory_space<vmem>>, vector<1x16x16xf32>
    %8 = vector.shape_cast %7 : vector<1x16x16xf32> to vector<16x16xf32>
    %c0_8 = arith.constant 0 : index
    %c0_9 = arith.constant 0 : index
    %9 = vector.load %arg9[%c0_8, %c0_9] : memref<16x128xf32, #tpu.memory_space<vmem>>, vector<16x128xf32>
    %cst_10 = arith.constant dense<0.000000e+00> : vector<16x128xf32>
    %10 = tpu.matmul %8, %6, %cst_10 {dimension_numbers = #tpu.dot_dimension_numbers<[1], [0], [0], [1], [0, 0, 1, 1], [], []>} : vector<16x16xf32>, vector<16x128xf32>, vector<16x128xf32> -> vector<16x128xf32>
    %11 = arith.addf %9, %10 : vector<16x128xf32>
    %c0_11 = arith.constant 0 : index
    %c0_12 = arith.constant 0 : index
    %12 = vector.load %arg9[%c0_11, %c0_12] : memref<16x128xf32, #tpu.memory_space<vmem>>, vector<16x128xf32>
    tpu.vector_store %arg9[%c0_11, %c0_12], %11 {strides = array<i32>} : memref<16x128xf32, #tpu.memory_space<vmem>>, vector<16x128xf32>,
    %c0_i32_13 = arith.constant 0 : i32
    %13 = arith.cmpi eq, %arg2, %c0_i32_13 : i32
    %14 = arith.extui %13 : i1 to i32
    %c0_i32_14 = arith.constant 0 : i32
    %15 = arith.cmpi ne, %14, %c0_i32_14 : i32
    scf.if %15 {
      %c0_15 = arith.constant 0 : index
      %c0_16 = arith.constant 0 : index
      %16 = vector.load %arg9[%c0_15, %c0_16] : memref<16x128xf32, #tpu.memory_space<vmem>>, vector<16x128xf32>
      %c0_17 = arith.constant 0 : index
      %c0_18 = arith.constant 0 : index
      %17 = vector.load %arg6[%c0_17, %c0_18] : memref<1x128xf32, #tpu.memory_space<vmem>>, vector<1x128xf32>
      %18 = vector.broadcast %17 : vector<1x128xf32> to vector<16x128xf32>
      %19 = arith.addf %16, %18 : vector<16x128xf32>
      %c0_19 = arith.constant 0 : index
      %20 = memref.load %arg7[%c0_19] : memref<1xf32, #tpu.memory_space<smem>>
      %cst_20 = arith.constant 0.000000e+00 : f32
      %21 = vector.broadcast %cst_20 : f32 to vector<16x128xf32>
      %22 = arith.cmpf ogt, %19, %21 : vector<16x128xf32>
      %23 = vector.broadcast %20 : f32 to vector<16x128xf32>
      %24 = arith.mulf %23, %19 : vector<16x128xf32>
      %25 = arith.select %22, %19, %24 : vector<16x128xi1>, vector<16x128xf32>
      %c0_21 = arith.constant 0 : index
      %c0_22 = arith.constant 0 : index
      %c0_23 = arith.constant 0 : index
      %26 = vector.load %arg8[%c0_21, %c0_22, %c0_23] : memref<1x16x128xf32, #tpu.memory_space<vmem>>, vector<1x16x128xf32>
      %27 = vector.shape_cast %26 : vector<1x16x128xf32> to vector<16x128xf32>
      %28 = vector.shape_cast %25 : vector<16x128xf32> to vector<1x16x128xf32>
      tpu.vector_store %arg8[%c0_21, %c0_22, %c0_23], %28 {strides = array<i32>} : memref<1x16x128xf32, #tpu.memory_space<vmem>>, vector<1x16x128xf32>,
    } else {
    }
    return
  }
  func.func @transform_0(%arg0: i32, %arg1: i32, %arg2: i32) -> (i32, i32, i32) {
    %c0_i32 = arith.constant 0 : i32
    %c0_i32_0 = arith.constant 0 : i32
    return %arg0, %arg2, %c0_i32 : i32, i32, i32
  }
  func.func @transform_1(%arg0: i32, %arg1: i32, %arg2: i32) -> (i32, i32, i32) {
    %c0_i32 = arith.constant 0 : i32
    return %arg0, %arg1, %arg2 : i32, i32, i32
  }
  func.func @transform_2(%arg0: i32, %arg1: i32, %arg2: i32) -> (i32, i32) {
    %c0_i32 = arith.constant 0 : i32
    %c0_i32_0 = arith.constant 0 : i32
    %c0_i32_1 = arith.constant 0 : i32
    return %c0_i32, %c0_i32_0 : i32, i32
  }
  func.func @transform_3(%arg0: i32, %arg1: i32, %arg2: i32) -> (i32, i32) {
    %c0_i32 = arith.constant 0 : i32
    %c0_i32_0 = arith.constant 0 : i32
    %c0_i32_1 = arith.constant 0 : i32
    return %c0_i32, %c0_i32_0 : i32, i32
  }
  func.func @transform_4(%arg0: i32, %arg1: i32, %arg2: i32) -> i32 {
    %c0_i32 = arith.constant 0 : i32
    %c0_i32_0 = arith.constant 0 : i32
    return %c0_i32 : i32
  }
  func.func @transform_5(%arg0: i32, %arg1: i32, %arg2: i32) -> (i32, i32, i32) {
    %c0_i32 = arith.constant 0 : i32
    %c0_i32_0 = arith.constant 0 : i32
    return %arg0, %arg1, %c0_i32 : i32, i32, i32
  }
}

</mosaic_0001>

<bundles_post_ra>
// kernel: gcn_layer_forward.1
= control target key start
LH: loop header
LB: loop body
LE: loop exit
PB: predicated region body
PF: predicated region fallthrough
CT: control target
= control target key end

     0   :  { %s847_s0 = inlined_call_operand.vmem [shape: f32[2,16,32], index: 0, kind: input, shape index: {}]   ;;  %s848_s1 = inlined_call_operand.vmem [shape: f32[2,16,16], index: 1, kind: input, shape index: {}]   ;;  %s849_s2 = inlined_call_operand.vmem [shape: f32[32,128], index: 2, kind: input, shape index: {}]   ;;  %s850_s3 = inlined_call_operand.vmem [shape: f32[1,128], index: 3, kind: input, shape index: {}]   ;;  %s851_s4 = inlined_call_operand.<no memory space> [shape: f32[1], index: 4, kind: input, shape index: {}]   ;;  %s852_s5 = inlined_call_operand.hbm [shape: f32[2,16,128], index: 5, kind: output, shape index: {}]  }
   0x1   :  { %10 = sst [smem:[#allocation3]] %s851_s4 }
   0x2   :  { %11 = vsyncpa [#allocation5], 0 }
   0x3   :  { %13 = vsyncpa [#allocation5 + $0x1], 0  ;;  %s732_s20 = smov 0   ;;  %s734_s21 = smov 0  }
   0x4   :  { %s736_s22 = smov 0   ;;  %s738_s23 = smov 0  }
   0x5   :  { %s740_s24 = smov 0   ;;  %s742_s25 = smov 0  }
   0x6 LB: > { %s531_s4 = sadd.s32 4294967295, %s695_s25   ;;  %s532_s26 = sadd.s32 4294967294, %s695_s25   ;;  %s695_s25 = sphi %s742_s25, %s19_s25   ;;  %s691_s24 = sphi %s740_s24, %s859_s24   ;;  %s687_s23 = sphi %s738_s23, %s858_s23   ;;  %s683_s22 = sphi %s736_s22, %s857_s22   ;;  %s679_s21 = sphi %s734_s21, %s856_s21   ;;  %s675_s20 = sphi %s732_s20, %s855_s20  }
   0x7   : > { %s38_s27 = sadd.s32 1, %s691_s24  ;;  %s168_s28 = sadd.s32 1, %s683_s22 }
   0x8   : > { %p40_p0 = scmp.ge.s32.totalorder %s38_s27, 2  ;;  %p178_p1 = scmp.ne.s32.totalorder %s683_s22, %s679_s21 }
   0x9   : > { %p179_p2 = scmp.eq.s32.totalorder %s531_s4, 1  ;;  %p184_p3 = scmp.ne.s32.totalorder %s679_s21, %s675_s20 }
   0xa   : > { %s861_s27 = smov (%p40_p0, %s38_s27), 0  ;;  %p185_p5 = scmp.eq.s32.totalorder %s532_s26, 1 }
   0xb   : > { %p772_p4 = por %p179_p2, %p178_p1  ;;  %s163_s30 = ssub.s32 %s691_s24, %s861_s27 }
   0xc   : > { %p535_p6 = scmp.ge.s32.totalorder %s695_s25, 1  ;;  %p166_p7 = scmp.eq.s32.totalorder %s163_s30, 0 }
   0xd   : > { %p779_p8 = por %p185_p5, %p184_p3  ;;  %p241_p9 = scmp.lt.s32.totalorder %s695_s25, 3 }
   0xe   : > { %s785_s7 = scalar_select %p166_p7, %s683_s22, %s168_s28  }
   0xf   : > { %p242_p10 = pnand %p535_p6, %p241_p9 }
  0x10   : > { %p286_p11 = scmp.lt.s32.totalorder (!%p242_p10), %s687_s23, 1  ;;  %s400_s8 = sld [smem:[#allocation3]] (!%p242_p10) }
  0x11   : > { %245 = sbr.rel (%p242_p10) target bundleno = 306 (0x132), region = 40  ;;  %s282_s9 = sand.u32 (!%p242_p10), 1, %s679_s21  }
  0x12   : > { %s536_s12 = sshll.u32 (!%p242_p10), %s282_s9, 4  ;;  %s552_s13 = sshll.u32 (!%p242_p10), %s687_s23, 4 }
  0x13   : > { %s424_s16 = scalar_lea.hbm (!%p242_p10), %s852_s5, %s552_s13 }
  0x14   : > { %s427_s19 = sshll.u32 (!%p242_p10), %s424_s16, 4  ;;  %s428_s19 = int_to_ptr.hbm [resolvable:$true] %s427_s19 }
  0x16   : > { %v320_v0 = vld [vmem:[%s849_s2 + $0x18] sm:$0xff]  ;;  %v319_v1 = vld [vmem:[%s849_s2 + $0x10] sm:$0xff]  ;;  %v318_v2 = vld [vmem:[%s849_s2 + $0x8] sm:$0xff]  ;;  %s287_s14 = scalar_select %p286_p11, %s687_s23, 1  ;;  %vm321_vm0 = vcmask 261120   ;;  %vm355_vm1 = vcmask 130048   ;;  %v403_v12 = vstv %s400_s8 }
  0x17   : > { %553 = vmatpush.msra.mxu2 %v320_v0  ;;  %340 = vmatpush.msra.mxu0 %v320_v0  ;;  %v317_v3 = vld [vmem:[%s849_s2] sm:$0xff]  ;;  %s411_s23 = scalar_lea.sflag [#allocation5], %s282_s9  ;;  %s637_s8 = scalar_lea.hbm %s852_s5, 32 }
  0x18   : > { %s550_s17 = sshll.u32 %s287_s14, 4  ;;  %v616_v10 = vld [vmem:[%s850_s3] ss:$0 sm:$0xff] }
  0x19   : > { %554 = vmatpush.msra.mxu2 %v319_v1  ;;  %341 = vmatpush.msra.mxu0 %v319_v1  ;;  %s293_s4 = scalar_lea.vmem %s847_s0, %s550_s17  ;;  %s306_s30 = scalar_lea.vmem %s848_s1, %s550_s17 }
  0x1a   : > { %v316_v4 = vld [vmem:[%s293_s4 + $0x8] sm:$0xff]  ;;  %v315_v5 = vld [vmem:[%s293_s4] sm:$0xff]  ;;  %s284_s17 = scalar_lea.vmem [#allocation4], %s536_s12  ;;  %s631_s4 = sshra.s32 %s428_s19, 4  ;;  %s632_s4 = int_to_ptr.hbm [resolvable:$true] %s631_s4 }
  0x1b   : > { %555 = vmatpush.msra.mxu2 %v318_v2  ;;  %342 = vmatpush.msra.mxu0 %v318_v2  ;;  %v352_v8 = vld [vmem:[%s306_s30 + $0x8] sm:$0xff]  ;;  %v351_v9 = vld [vmem:[%s306_s30] sm:$0xff]  ;;  %s425_s18 = sshll.u32 %s284_s17, 4  ;;  %s633_s26 = scalar_lea.hbm %s632_s4, 16  ;;  %s426_s18 = int_to_ptr.vmem [resolvable:$true] %s425_s18 }
  0x1c   : > { %p634_p12 = scmp.ne.s32.totalorder %s632_s4, %s633_s26  ;;  %p638_p1 = scmp.lt.s32.totalorder %s632_s4, %s852_s5 }
  0x1d   : > { %556 = vmatpush.msra.mxu2 %v317_v3  ;;  %343 = vmatpush.msra.mxu0 %v317_v3  ;;  %p639_p2 = scmp.lt.s32.totalorder %s637_s8, %s633_s26 }
  0x1e   : > { %542 = vmatmul.msk.f32.vlgmr.msra.gmra.mxu2 %vm321_vm0, %v316_v4  ;;  %541 = vmatmul.msk.f32.vlgmr.msra.gmra.mxu0 %vm321_vm0, %v315_v5  ;;  %p635_p13 = pnand %p634_p12, %p772_p4 }
  0x1f   : > { %p640_p3 = por %p639_p2, %p638_p1 }
  0x20   : > { %p636_p0 = pneg %p635_p13 }
  0x22   : > { %p641_p5 = pnand %p640_p3, %p636_p0 }
  0x9b   : > { %v345_v7 = vpop.f32.mrf.mxu0 }
  0xa1   : > { %v348_v6 = vpop.f32.mrf.mxu2 }
  0xa2   : > { %376 = vmatpush.msra.mxu1 %v348_v6  ;;  %557 = vmatpush.msra.mxu3 %v348_v6 }
  0xa4   : > { %377 = vmatpush.msra.mxu1 %v345_v7  ;;  %558 = vmatpush.msra.mxu3 %v345_v7 }
  0xa5   : > { %544 = vmatmul.msk.f32.vlgmr.msra.gmra.mxu3 %vm355_vm1, %v352_v8  ;;  %543 = vmatmul.msk.f32.vlgmr.msra.gmra.mxu1 %vm355_vm1, %v351_v9 }
 0x122   : > { %v379_v11 = vpop.f32.mrf.mxu1 }
 0x123   : > { %v398_v13 = vadd.f32 %v616_v10, %v379_v11 }
 0x125   : > { %vm401_vm2 = vcmp.gt.f32.partialorder %v398_v13, 0.0  ;;  %v404_v14 = vmul.f32 %v403_v12, %v398_v13 }
 0x127   : > { %v406_v15 = vsel %vm401_vm2, %v398_v13, %v404_v14 }
 0x128   : > { %408 = vst [vmem:[%s284_s17] sm:$0xff] %v406_v15  ;;  %v382_v16 = vpop.f32.mrf.mxu3 }
 0x129   : > { %v399_v17 = vadd.f32 %v616_v10, %v382_v16 }
 0x12b   : > { %vm402_vm3 = vcmp.gt.f32.partialorder %v399_v17, 0.0  ;;  %v405_v18 = vmul.f32 %v403_v12, %v399_v17 }
 0x12d   : > { %v407_v19 = vsel %vm402_vm3, %v399_v17, %v405_v18 }
 0x12e   : > { %409 = vst [vmem:[%s284_s17 + $0x8] sm:$0xff] %v407_v19 }
 0x12f   : > { %644 = shalt.err (!%p641_p5)
}
 0x130   : > { %s697_s9 = smov 128   ;;  %s698_s12 = smov 8  }
 0x131   : > { %559 = dma.vmem_to_hbm [thread:$0]  (%p772_p4), %s426_s18, 256, %s428_s19, %s411_s23, %s697_s9, %s697_s9, %s698_s12  }
 0x132 PF: > { %p565_p6 = scmp.ge.s32.totalorder %s695_s25, 2  ;;  %s442_s13 = sand.u32 1, %s675_s20  }
 0x133   : > { %s443_s14 = scalar_lea.sflag [#allocation5], %s442_s13 }
 0x134   : > { %p562_p7 = pnand %p565_p6, %p779_p8 }
 0x136   : > { %p563_p9 = pneg %p562_p7 }
 0x138   : > { %670 = dma.done.wait (%p563_p9), %s443_s14, 256  }
 0x139   : > { %672 = vsyncadd (%p563_p9), %s443_s14, 4294967040  ;;  %s19_s25 = sadd.s32 1, %s695_s25   ;;  %s855_s20 = smov %s679_s21 }
 0x13a   : > { %p16_p10 = scmp.ge.s32.totalorder %s19_s25, 4   ;;  %s856_s21 = smov %s683_s22 }
 0x13b   : > { %s857_s22 = smov %s785_s7  ;;  %s858_s23 = smov %s691_s24 }
 0x13c   : > { %s859_s24 = smov %s861_s27  ;;  %18 = sbr.rel (!%p16_p10) target bundleno = 6 (0x6), region = 86 }
 0x141   :  { %449 = vsyncpa [#allocation5], 1 }
 0x142   :  { %451 = vsyncpa [#allocation5 + $0x1], 1 }

</bundles_post_ra>
